<compile_context>
chip_gen: v7x
topology: tpu7x:2x2x1
jax: 0.10.0
libtpu: 0.0.40
codegen_flags: <defaults>
</compile_context>

<pallas_src>
import functools

import numpy as np
import jax
import jax.numpy as jnp
from jax import lax
from jax.experimental import pallas as pl
from jax.experimental.pallas import tpu as pltpu

NEG = -1e30      # finite stand-in for -inf (kept bounded by per-step re-masking)
LANE_B = 8       # samples per grid step (f32 sublane count)


def _forwardsum_kernel(ilens_ref, olens_ref, lp_ref, out_ref, *, log_blank):
    # ilens_ref / olens_ref : SMEM (G*8,) int32 scalar-prefetch
    # lp_ref : (T_feats, 8, T_text) raw attention log-probs for 8 samples
    # out_ref: (8, 1) per-sample loss (zero_infinity + /N already applied)
    Tf, NB, Tt = lp_ref.shape
    base = pl.program_id(0) * NB

    # --- per-sample lengths as (8,1) sublane vectors + scalar tile max T ---
    sub = lax.broadcasted_iota(jnp.int32, (NB, 1), 0)
    n_vec = jnp.zeros((NB, 1), jnp.int32)
    t_vec = jnp.zeros((NB, 1), jnp.int32)
    t_max = jnp.int32(0)
    for i in range(NB):
        n_i = ilens_ref[base + i]
        t_i = olens_ref[base + i]
        n_vec = jnp.where(sub == i, n_i, n_vec)
        t_vec = jnp.where(sub == i, t_i, t_vec)
        t_max = jnp.maximum(t_max, t_i)
    t_max = jnp.minimum(t_max, Tf)

    # lane j corresponds to CTC token j+1 (text column j); valid for j < N
    lane = lax.broadcasted_iota(jnp.int32, (NB, Tt), 1)
    tok_mask = lane < n_vec
    lane0 = lane == 0

    def lse2(a, b):
        m = jnp.maximum(a, b)
        return m + jnp.log(jnp.exp(a - m) + jnp.exp(b - m))

    def lse3(a, b, c):
        m = jnp.maximum(jnp.maximum(a, b), c)
        return m + jnp.log(jnp.exp(a - m) + jnp.exp(b - m) + jnp.exp(c - m))

    def emissions(t):
        # masked log-softmax over the N valid token columns + constant blank
        x = lp_ref[t].astype(jnp.float32)                      # (8, Tt)
        xm = jnp.where(tok_mask, x, NEG)
        m = jnp.maximum(jnp.max(xm, axis=-1, keepdims=True), log_blank)
        denom = (jnp.sum(jnp.exp(xm - m), axis=-1, keepdims=True)
                 + jnp.exp(log_blank - m))
        lse = m + jnp.log(denom)                               # (8, 1)
        return xm - lse, log_blank - lse                       # tokens, blank

    # --- t = 0 init: alpha[blank_0] = blank_0 ; alpha[token_1] = token_1 ---
    tok0, blank0 = emissions(0)
    ab0 = blank0                                               # (8,1)  s = 0
    al = jnp.where(lane0 & tok_mask, tok0, NEG)                # (8,Tt) s = 2j+1
    ab = jnp.full((NB, Tt), NEG, jnp.float32)                  # (8,Tt) s = 2j+2

    # --- CTC forward recursion over frames 1 .. T-1 (log domain) ---
    def body(t, carry):
        ab, al, ab0 = carry
        tok_t, blank_t = emissions(t)
        ab_left = jnp.where(lane0, ab0, pltpu.roll(ab, shift=1, axis=1))
        al_left = jnp.where(lane0, NEG, pltpu.roll(al, shift=1, axis=1))
        new_al = lse3(al, ab_left, al_left) + tok_t
        new_ab = lse2(ab, al) + blank_t
        new_al = jnp.where(tok_mask, new_al, NEG)
        new_ab = jnp.where(tok_mask, new_ab, NEG)
        new_ab0 = ab0 + blank_t
        active = t < t_vec                                     # (8,1) per-sample
        ab = jnp.where(active, new_ab, ab)
        al = jnp.where(active, new_al, al)
        ab0 = jnp.where(active, new_ab0, ab0)
        return ab, al, ab0

    ab, al, ab0 = lax.fori_loop(1, t_max, body, (ab, al, ab0))

    # total log-prob = logsumexp(alpha[blank_N], alpha[token_N])  (lane N-1)
    end_mask = lane == (n_vec - 1)
    end_b = jnp.max(jnp.where(end_mask, ab, NEG), axis=-1, keepdims=True)
    end_l = jnp.max(jnp.where(end_mask, al, NEG), axis=-1, keepdims=True)
    nll = -lse2(end_b, end_l)                                  # (8,1)

    # F.ctc_loss(reduction='mean', zero_infinity=True) with single-sample batch
    feasible = (t_vec >= n_vec) & (n_vec >= 1)
    n_f = jnp.maximum(n_vec.astype(jnp.float32), 1.0)
    out_ref[...] = jnp.where(feasible, nll / n_f, 0.0)


def forward_sum_loss(log_p_attn, ilens, olens, blank_prob=float(np.e ** (-1))):
    """log_p_attn: (B, T_feats, T_text); ilens, olens: (B,) int."""
    B, Tf, Tt = log_p_attn.shape
    Bp = ((B + LANE_B - 1) // LANE_B) * LANE_B
    G = Bp // LANE_B
    ilens = ilens.astype(jnp.int32)
    olens = olens.astype(jnp.int32)
    if Bp != B:
        log_p_attn = jnp.pad(log_p_attn, ((0, Bp - B), (0, 0), (0, 0)))
        ilens = jnp.pad(ilens, (0, Bp - B))        # padded samples: N = T = 0
        olens = jnp.pad(olens, (0, Bp - B))
    # frame-major layout so each grid step sees a (Tf, 8, Tt) tile with the 8
    # samples on sublanes; input dtype is preserved (cast happens in-kernel).
    lp_fm = jnp.transpose(log_p_attn, (1, 0, 2))   # (Tf, Bp, Tt)

    in_bytes = Tf * LANE_B * Tt * jnp.dtype(lp_fm.dtype).itemsize
    vmem_limit = max(32 << 20, min(2 * in_bytes + (8 << 20), 64 << 20))

    kernel = functools.partial(_forwardsum_kernel,
                               log_blank=float(np.log(blank_prob)))
    grid_spec = pltpu.PrefetchScalarGridSpec(
        num_scalar_prefetch=2,
        grid=(G,),
        in_specs=[pl.BlockSpec((Tf, LANE_B, Tt), lambda g, il, ol: (0, g, 0))],
        out_specs=pl.BlockSpec((LANE_B, 1), lambda g, il, ol: (g, 0)),
    )
    per_sample = pl.pallas_call(
        kernel,
        grid_spec=grid_spec,
        out_shape=jax.ShapeDtypeStruct((Bp, 1), jnp.float32),
        compiler_params=pltpu.CompilerParams(
            dimension_semantics=("parallel",),
            vmem_limit_bytes=int(vmem_limit),
        ),
    )(ilens, olens, lp_fm)
    return jnp.sum(per_sample) / B


def _ref_loss(log_p_attn, ilens, olens, blank_prob):
    """Pure-numpy reference of ForwardSumLoss.forward (CTC forward algorithm)."""
    log_p_attn = np.asarray(log_p_attn, dtype=np.float64)
    B, Tf, Tt = log_p_attn.shape
    total = 0.0
    for b in range(B):
        N = int(ilens[b]); T = int(olens[b])
        lp = np.concatenate(
            [np.full((Tf, 1), np.log(blank_prob)), log_p_attn[b]], axis=1)
        cur = lp[:T, :N + 1]
        mx = cur.max(axis=-1, keepdims=True)
        cur = cur - (mx + np.log(np.exp(cur - mx).sum(-1, keepdims=True)))
        S = 2 * N + 1
        labels = np.array([0 if s % 2 == 0 else (s + 1) // 2 for s in range(S)])
        odd = (np.arange(S) % 2) == 1
        alpha = np.full(S, -np.inf)
        alpha[0] = cur[0, 0]
        if S > 1:
            alpha[1] = cur[0, labels[1]]
        for t in range(1, T):
            s1 = np.concatenate([[-np.inf], alpha[:-1]])
            s2 = np.concatenate([[-np.inf, -np.inf], alpha[:-2]])
            val = np.logaddexp(alpha, s1)
            val = np.where(odd, np.logaddexp(val, s2), val)  # skip: distinct labels
            alpha = val + cur[t, labels]
        nll = -np.logaddexp(alpha[S - 1], alpha[S - 2])
        nll = 0.0 if not np.isfinite(nll) else nll / N
        total += nll
    return total / B


if __name__ == "__main__":
    key = jax.random.PRNGKey(0)
    B, Tf, Tt = 12, 160, 128
    log_p_attn = jax.nn.log_softmax(
        jax.random.normal(key, (B, Tf, Tt), dtype=jnp.float32), axis=-1)
    # text lengths (<= Tt) and feature lengths (<= Tf); sample 5 is infeasible
    # (T < N) to exercise zero_infinity.
    ilens = jnp.array([128, 96, 64, 100, 32, 120, 80, 50, 128, 16, 64, 90],
                      dtype=jnp.int32)
    olens = jnp.array([160, 120, 80, 144, 64, 100, 96, 72, 160, 40, 128, 110],
                      dtype=jnp.int32)

    loss = forward_sum_loss(log_p_attn, ilens, olens)
    loss = jax.block_until_ready(loss)

    ref = _ref_loss(np.asarray(log_p_attn), np.asarray(ilens), np.asarray(olens),
                    float(np.e ** (-1)))
    assert np.isfinite(float(loss)), float(loss)
    assert np.allclose(float(loss), ref, rtol=5e-3, atol=5e-3), (float(loss), ref)
    print("KERNEL_OK")
</pallas_src>

<mosaic_0001>
module attributes {stable_mosaic.version = 11 : i64} {
  func.func @_forwardsum_kernel(%arg0: i32, %arg1: memref<16xi32, #tpu.memory_space<smem>>, %arg2: memref<16xi32, #tpu.memory_space<smem>>, %arg3: memref<160x8x128xf32, #tpu.memory_space<vmem>>, %arg4: memref<8x1xf32, #tpu.memory_space<vmem>>) attributes {dimension_semantics = [#tpu.dimension_semantics<parallel>], iteration_bounds = array<i64: 2>, scalar_prefetch = 2 : i64, scratch_operands = 0 : i64, tpu.core_type = #tpu.core_type<tc>, window_params = [{transform_indices = @transform_0, window_bounds = array<i64: 160, 8, 128>}, {transform_indices = @transform_1, window_bounds = array<i64: 8, 1>}]} {
    %c8_i32 = arith.constant 8 : i32
    %0 = arith.muli %arg0, %c8_i32 : i32
    %1 = tpu.iota {dimensions = array<i32: 0>} : vector<8x1xi32>
    %c0_i32 = arith.constant 0 : i32
    %2 = vector.broadcast %c0_i32 : i32 to vector<8x1xi32>
    %c0_i32_0 = arith.constant 0 : i32
    %3 = vector.broadcast %c0_i32_0 : i32 to vector<8x1xi32>
    %c0_i32_1 = arith.constant 0 : i32
    %4 = arith.addi %0, %c0_i32_1 : i32
    %5 = arith.index_cast %4 : i32 to index
    %6 = memref.load %arg1[%5] : memref<16xi32, #tpu.memory_space<smem>>
    %c0_i32_2 = arith.constant 0 : i32
    %7 = arith.addi %0, %c0_i32_2 : i32
    %8 = arith.index_cast %7 : i32 to index
    %9 = memref.load %arg2[%8] : memref<16xi32, #tpu.memory_space<smem>>
    %c0_i32_3 = arith.constant 0 : i32
    %10 = vector.broadcast %c0_i32_3 : i32 to vector<8x1xi32>
    %11 = arith.cmpi eq, %1, %10 : vector<8x1xi32>
    %12 = vector.broadcast %6 : i32 to vector<8x1xi32>
    %13 = arith.select %11, %12, %2 : vector<8x1xi1>, vector<8x1xi32>
    %c0_i32_4 = arith.constant 0 : i32
    %14 = vector.broadcast %c0_i32_4 : i32 to vector<8x1xi32>
    %15 = arith.cmpi eq, %1, %14 : vector<8x1xi32>
    %16 = vector.broadcast %9 : i32 to vector<8x1xi32>
    %17 = arith.select %15, %16, %3 : vector<8x1xi1>, vector<8x1xi32>
    %c0_i32_5 = arith.constant 0 : i32
    %18 = arith.maxsi %c0_i32_5, %9 : i32
    %c1_i32 = arith.constant 1 : i32
    %19 = arith.addi %0, %c1_i32 : i32
    %20 = arith.index_cast %19 : i32 to index
    %21 = memref.load %arg1[%20] : memref<16xi32, #tpu.memory_space<smem>>
    %c1_i32_6 = arith.constant 1 : i32
    %22 = arith.addi %0, %c1_i32_6 : i32
    %23 = arith.index_cast %22 : i32 to index
    %24 = memref.load %arg2[%23] : memref<16xi32, #tpu.memory_space<smem>>
    %c1_i32_7 = arith.constant 1 : i32
    %25 = vector.broadcast %c1_i32_7 : i32 to vector<8x1xi32>
    %26 = arith.cmpi eq, %1, %25 : vector<8x1xi32>
    %27 = vector.broadcast %21 : i32 to vector<8x1xi32>
    %28 = arith.select %26, %27, %13 : vector<8x1xi1>, vector<8x1xi32>
    %c1_i32_8 = arith.constant 1 : i32
    %29 = vector.broadcast %c1_i32_8 : i32 to vector<8x1xi32>
    %30 = arith.cmpi eq, %1, %29 : vector<8x1xi32>
    %31 = vector.broadcast %24 : i32 to vector<8x1xi32>
    %32 = arith.select %30, %31, %17 : vector<8x1xi1>, vector<8x1xi32>
    %33 = arith.maxsi %18, %24 : i32
    %c2_i32 = arith.constant 2 : i32
    %34 = arith.addi %0, %c2_i32 : i32
    %35 = arith.index_cast %34 : i32 to index
    %36 = memref.load %arg1[%35] : memref<16xi32, #tpu.memory_space<smem>>
    %c2_i32_9 = arith.constant 2 : i32
    %37 = arith.addi %0, %c2_i32_9 : i32
    %38 = arith.index_cast %37 : i32 to index
    %39 = memref.load %arg2[%38] : memref<16xi32, #tpu.memory_space<smem>>
    %c2_i32_10 = arith.constant 2 : i32
    %40 = vector.broadcast %c2_i32_10 : i32 to vector<8x1xi32>
    %41 = arith.cmpi eq, %1, %40 : vector<8x1xi32>
    %42 = vector.broadcast %36 : i32 to vector<8x1xi32>
    %43 = arith.select %41, %42, %28 : vector<8x1xi1>, vector<8x1xi32>
    %c2_i32_11 = arith.constant 2 : i32
    %44 = vector.broadcast %c2_i32_11 : i32 to vector<8x1xi32>
    %45 = arith.cmpi eq, %1, %44 : vector<8x1xi32>
    %46 = vector.broadcast %39 : i32 to vector<8x1xi32>
    %47 = arith.select %45, %46, %32 : vector<8x1xi1>, vector<8x1xi32>
    %48 = arith.maxsi %33, %39 : i32
    %c3_i32 = arith.constant 3 : i32
    %49 = arith.addi %0, %c3_i32 : i32
    %50 = arith.index_cast %49 : i32 to index
    %51 = memref.load %arg1[%50] : memref<16xi32, #tpu.memory_space<smem>>
    %c3_i32_12 = arith.constant 3 : i32
    %52 = arith.addi %0, %c3_i32_12 : i32
    %53 = arith.index_cast %52 : i32 to index
    %54 = memref.load %arg2[%53] : memref<16xi32, #tpu.memory_space<smem>>
    %c3_i32_13 = arith.constant 3 : i32
    %55 = vector.broadcast %c3_i32_13 : i32 to vector<8x1xi32>
    %56 = arith.cmpi eq, %1, %55 : vector<8x1xi32>
    %57 = vector.broadcast %51 : i32 to vector<8x1xi32>
    %58 = arith.select %56, %57, %43 : vector<8x1xi1>, vector<8x1xi32>
    %c3_i32_14 = arith.constant 3 : i32
    %59 = vector.broadcast %c3_i32_14 : i32 to vector<8x1xi32>
    %60 = arith.cmpi eq, %1, %59 : vector<8x1xi32>
    %61 = vector.broadcast %54 : i32 to vector<8x1xi32>
    %62 = arith.select %60, %61, %47 : vector<8x1xi1>, vector<8x1xi32>
    %63 = arith.maxsi %48, %54 : i32
    %c4_i32 = arith.constant 4 : i32
    %64 = arith.addi %0, %c4_i32 : i32
    %65 = arith.index_cast %64 : i32 to index
    %66 = memref.load %arg1[%65] : memref<16xi32, #tpu.memory_space<smem>>
    %c4_i32_15 = arith.constant 4 : i32
    %67 = arith.addi %0, %c4_i32_15 : i32
    %68 = arith.index_cast %67 : i32 to index
    %69 = memref.load %arg2[%68] : memref<16xi32, #tpu.memory_space<smem>>
    %c4_i32_16 = arith.constant 4 : i32
    %70 = vector.broadcast %c4_i32_16 : i32 to vector<8x1xi32>
    %71 = arith.cmpi eq, %1, %70 : vector<8x1xi32>
    %72 = vector.broadcast %66 : i32 to vector<8x1xi32>
    %73 = arith.select %71, %72, %58 : vector<8x1xi1>, vector<8x1xi32>
    %c4_i32_17 = arith.constant 4 : i32
    %74 = vector.broadcast %c4_i32_17 : i32 to vector<8x1xi32>
    %75 = arith.cmpi eq, %1, %74 : vector<8x1xi32>
    %76 = vector.broadcast %69 : i32 to vector<8x1xi32>
    %77 = arith.select %75, %76, %62 : vector<8x1xi1>, vector<8x1xi32>
    %78 = arith.maxsi %63, %69 : i32
    %c5_i32 = arith.constant 5 : i32
    %79 = arith.addi %0, %c5_i32 : i32
    %80 = arith.index_cast %79 : i32 to index
    %81 = memref.load %arg1[%80] : memref<16xi32, #tpu.memory_space<smem>>
    %c5_i32_18 = arith.constant 5 : i32
    %82 = arith.addi %0, %c5_i32_18 : i32
    %83 = arith.index_cast %82 : i32 to index
    %84 = memref.load %arg2[%83] : memref<16xi32, #tpu.memory_space<smem>>
    %c5_i32_19 = arith.constant 5 : i32
    %85 = vector.broadcast %c5_i32_19 : i32 to vector<8x1xi32>
    %86 = arith.cmpi eq, %1, %85 : vector<8x1xi32>
    %87 = vector.broadcast %81 : i32 to vector<8x1xi32>
    %88 = arith.select %86, %87, %73 : vector<8x1xi1>, vector<8x1xi32>
    %c5_i32_20 = arith.constant 5 : i32
    %89 = vector.broadcast %c5_i32_20 : i32 to vector<8x1xi32>
    %90 = arith.cmpi eq, %1, %89 : vector<8x1xi32>
    %91 = vector.broadcast %84 : i32 to vector<8x1xi32>
    %92 = arith.select %90, %91, %77 : vector<8x1xi1>, vector<8x1xi32>
    %93 = arith.maxsi %78, %84 : i32
    %c6_i32 = arith.constant 6 : i32
    %94 = arith.addi %0, %c6_i32 : i32
    %95 = arith.index_cast %94 : i32 to index
    %96 = memref.load %arg1[%95] : memref<16xi32, #tpu.memory_space<smem>>
    %c6_i32_21 = arith.constant 6 : i32
    %97 = arith.addi %0, %c6_i32_21 : i32
    %98 = arith.index_cast %97 : i32 to index
    %99 = memref.load %arg2[%98] : memref<16xi32, #tpu.memory_space<smem>>
    %c6_i32_22 = arith.constant 6 : i32
    %100 = vector.broadcast %c6_i32_22 : i32 to vector<8x1xi32>
    %101 = arith.cmpi eq, %1, %100 : vector<8x1xi32>
    %102 = vector.broadcast %96 : i32 to vector<8x1xi32>
    %103 = arith.select %101, %102, %88 : vector<8x1xi1>, vector<8x1xi32>
    %c6_i32_23 = arith.constant 6 : i32
    %104 = vector.broadcast %c6_i32_23 : i32 to vector<8x1xi32>
    %105 = arith.cmpi eq, %1, %104 : vector<8x1xi32>
    %106 = vector.broadcast %99 : i32 to vector<8x1xi32>
    %107 = arith.select %105, %106, %92 : vector<8x1xi1>, vector<8x1xi32>
    %108 = arith.maxsi %93, %99 : i32
    %c7_i32 = arith.constant 7 : i32
    %109 = arith.addi %0, %c7_i32 : i32
    %110 = arith.index_cast %109 : i32 to index
    %111 = memref.load %arg1[%110] : memref<16xi32, #tpu.memory_space<smem>>
    %c7_i32_24 = arith.constant 7 : i32
    %112 = arith.addi %0, %c7_i32_24 : i32
    %113 = arith.index_cast %112 : i32 to index
    %114 = memref.load %arg2[%113] : memref<16xi32, #tpu.memory_space<smem>>
    %c7_i32_25 = arith.constant 7 : i32
    %115 = vector.broadcast %c7_i32_25 : i32 to vector<8x1xi32>
    %116 = arith.cmpi eq, %1, %115 : vector<8x1xi32>
    %117 = vector.broadcast %111 : i32 to vector<8x1xi32>
    %118 = arith.select %116, %117, %103 : vector<8x1xi1>, vector<8x1xi32>
    %c7_i32_26 = arith.constant 7 : i32
    %119 = vector.broadcast %c7_i32_26 : i32 to vector<8x1xi32>
    %120 = arith.cmpi eq, %1, %119 : vector<8x1xi32>
    %121 = vector.broadcast %114 : i32 to vector<8x1xi32>
    %122 = arith.select %120, %121, %107 : vector<8x1xi1>, vector<8x1xi32>
    %123 = arith.maxsi %108, %114 : i32
    %c160_i32 = arith.constant 160 : i32
    %124 = arith.minsi %123, %c160_i32 : i32
    %125 = tpu.iota {dimensions = array<i32: 1>} : vector<8x128xi32>
    %126 = vector.broadcast %118 : vector<8x1xi32> to vector<8x128xi32>
    %127 = arith.cmpi slt, %125, %126 : vector<8x128xi32>
    %c0_i32_27 = arith.constant 0 : i32
    %128 = vector.broadcast %c0_i32_27 : i32 to vector<8x128xi32>
    %129 = arith.cmpi eq, %125, %128 : vector<8x128xi32>
    %c0 = arith.constant 0 : index
    %c0_28 = arith.constant 0 : index
    %c0_29 = arith.constant 0 : index
    %130 = vector.load %arg3[%c0, %c0_28, %c0_29] : memref<160x8x128xf32, #tpu.memory_space<vmem>>, vector<1x8x128xf32>
    %131 = vector.shape_cast %130 : vector<1x8x128xf32> to vector<8x128xf32>
    %cst = arith.constant -1.000000e+30 : f32
    %132 = vector.broadcast %cst : f32 to vector<8x128xf32>
    %133 = arith.select %127, %131, %132 : vector<8x128xi1>, vector<8x128xf32>
    %cst_30 = arith.constant dense<0xFF800000> : vector<8xf32>
    %134 = vector.multi_reduction <maximumf>, %133, %cst_30 [1] : vector<8x128xf32> to vector<8xf32>
    %135 = vector.shape_cast %134 : vector<8xf32> to vector<8x1xf32>
    %cst_31 = arith.constant -1.000000e+00 : f32
    %136 = vector.broadcast %cst_31 : f32 to vector<8x1xf32>
    %137 = arith.maximumf %135, %136 : vector<8x1xf32>
    %138 = vector.broadcast %137 : vector<8x1xf32> to vector<8x128xf32>
    %139 = arith.subf %133, %138 : vector<8x128xf32>
    %140 = math.exp %139 : vector<8x128xf32>
    %cst_32 = arith.constant dense<0.000000e+00> : vector<8xf32>
    %141 = vector.multi_reduction <add>, %140, %cst_32 [1] : vector<8x128xf32> to vector<8xf32>
    %142 = vector.shape_cast %141 : vector<8xf32> to vector<8x1xf32>
    %cst_33 = arith.constant -1.000000e+00 : f32
    %143 = vector.broadcast %cst_33 : f32 to vector<8x1xf32>
    %144 = arith.subf %143, %137 : vector<8x1xf32>
    %145 = math.exp %144 : vector<8x1xf32>
    %146 = arith.addf %142, %145 : vector<8x1xf32>
    %147 = math.log %146 : vector<8x1xf32>
    %148 = arith.addf %137, %147 : vector<8x1xf32>
    %149 = vector.broadcast %148 : vector<8x1xf32> to vector<8x128xf32>
    %150 = arith.subf %133, %149 : vector<8x128xf32>
    %cst_34 = arith.constant -1.000000e+00 : f32
    %151 = vector.broadcast %cst_34 : f32 to vector<8x1xf32>
    %152 = arith.subf %151, %148 : vector<8x1xf32>
    %153 = arith.andi %129, %127 : vector<8x128xi1>
    %cst_35 = arith.constant -1.000000e+30 : f32
    %154 = vector.broadcast %cst_35 : f32 to vector<8x128xf32>
    %155 = arith.select %153, %150, %154 : vector<8x128xi1>, vector<8x128xf32>
    %cst_36 = arith.constant -1.000000e+30 : f32
    %156 = vector.broadcast %cst_36 : f32 to vector<8x128xf32>
    %c1_i32_37 = arith.constant 1 : i32
    %157 = arith.subi %124, %c1_i32_37 : i32
    %158 = arith.addi %c1_i32_37, %157 : i32
    %c1_i32_38 = arith.constant 1 : i32
    %159:3 = scf.for %arg5 = %c1_i32_37 to %158 step %c1_i32_38 iter_args(%arg6 = %156, %arg7 = %155, %arg8 = %152) -> (vector<8x128xf32>, vector<8x128xf32>, vector<8x1xf32>)  : i32 {
      %193 = arith.index_cast %arg5 : i32 to index
      %c0_50 = arith.constant 0 : index
      %c0_51 = arith.constant 0 : index
      %194 = vector.load %arg3[%193, %c0_50, %c0_51] : memref<160x8x128xf32, #tpu.memory_space<vmem>>, vector<1x8x128xf32>
      %195 = vector.shape_cast %194 : vector<1x8x128xf32> to vector<8x128xf32>
      %cst_52 = arith.constant -1.000000e+30 : f32
      %196 = vector.broadcast %cst_52 : f32 to vector<8x128xf32>
      %197 = arith.select %127, %195, %196 : vector<8x128xi1>, vector<8x128xf32>
      %cst_53 = arith.constant dense<0xFF800000> : vector<8xf32>
      %198 = vector.multi_reduction <maximumf>, %197, %cst_53 [1] : vector<8x128xf32> to vector<8xf32>
      %199 = vector.shape_cast %198 : vector<8xf32> to vector<8x1xf32>
      %cst_54 = arith.constant -1.000000e+00 : f32
      %200 = vector.broadcast %cst_54 : f32 to vector<8x1xf32>
      %201 = arith.maximumf %199, %200 : vector<8x1xf32>
      %202 = vector.broadcast %201 : vector<8x1xf32> to vector<8x128xf32>
      %203 = arith.subf %197, %202 : vector<8x128xf32>
      %204 = math.exp %203 : vector<8x128xf32>
      %cst_55 = arith.constant dense<0.000000e+00> : vector<8xf32>
      %205 = vector.multi_reduction <add>, %204, %cst_55 [1] : vector<8x128xf32> to vector<8xf32>
      %206 = vector.shape_cast %205 : vector<8xf32> to vector<8x1xf32>
      %cst_56 = arith.constant -1.000000e+00 : f32
      %207 = vector.broadcast %cst_56 : f32 to vector<8x1xf32>
      %208 = arith.subf %207, %201 : vector<8x1xf32>
      %209 = math.exp %208 : vector<8x1xf32>
      %210 = arith.addf %206, %209 : vector<8x1xf32>
      %211 = math.log %210 : vector<8x1xf32>
      %212 = arith.addf %201, %211 : vector<8x1xf32>
      %213 = vector.broadcast %212 : vector<8x1xf32> to vector<8x128xf32>
      %214 = arith.subf %197, %213 : vector<8x128xf32>
      %cst_57 = arith.constant -1.000000e+00 : f32
      %215 = vector.broadcast %cst_57 : f32 to vector<8x1xf32>
      %216 = arith.subf %215, %212 : vector<8x1xf32>
      %c1_i32_58 = arith.constant 1 : i32
      %217 = tpu.dynamic_rotate %arg6 by %c1_i32_58 dim 1 : vector<8x128xf32>, i32 -> vector<8x128xf32>
      %218 = vector.shape_cast %arg8 : vector<8x1xf32> to vector<8x1xf32>
      %219 = vector.broadcast %218 : vector<8x1xf32> to vector<8x128xf32>
      %220 = arith.select %129, %219, %217 : vector<8x128xi1>, vector<8x128xf32>
      %c1_i32_59 = arith.constant 1 : i32
      %221 = tpu.dynamic_rotate %arg7 by %c1_i32_59 dim 1 : vector<8x128xf32>, i32 -> vector<8x128xf32>
      %cst_60 = arith.constant -1.000000e+30 : f32
      %222 = vector.broadcast %cst_60 : f32 to vector<8x128xf32>
      %223 = arith.select %129, %222, %221 : vector<8x128xi1>, vector<8x128xf32>
      %224 = arith.maximumf %arg7, %220 : vector<8x128xf32>
      %225 = arith.maximumf %224, %223 : vector<8x128xf32>
      %226 = arith.subf %arg7, %225 : vector<8x128xf32>
      %227 = math.exp %226 : vector<8x128xf32>
      %228 = arith.subf %220, %225 : vector<8x128xf32>
      %229 = math.exp %228 : vector<8x128xf32>
      %230 = arith.addf %227, %229 : vector<8x128xf32>
      %231 = arith.subf %223, %225 : vector<8x128xf32>
      %232 = math.exp %231 : vector<8x128xf32>
      %233 = arith.addf %230, %232 : vector<8x128xf32>
      %234 = math.log %233 : vector<8x128xf32>
      %235 = arith.addf %225, %234 : vector<8x128xf32>
      %236 = arith.addf %235, %214 : vector<8x128xf32>
      %237 = arith.maximumf %arg6, %arg7 : vector<8x128xf32>
      %238 = arith.subf %arg6, %237 : vector<8x128xf32>
      %239 = math.exp %238 : vector<8x128xf32>
      %240 = arith.subf %arg7, %237 : vector<8x128xf32>
      %241 = math.exp %240 : vector<8x128xf32>
      %242 = arith.addf %239, %241 : vector<8x128xf32>
      %243 = math.log %242 : vector<8x128xf32>
      %244 = arith.addf %237, %243 : vector<8x128xf32>
      %245 = vector.broadcast %216 : vector<8x1xf32> to vector<8x128xf32>
      %246 = arith.addf %244, %245 : vector<8x128xf32>
      %cst_61 = arith.constant -1.000000e+30 : f32
      %247 = vector.broadcast %cst_61 : f32 to vector<8x128xf32>
      %248 = arith.select %127, %236, %247 : vector<8x128xi1>, vector<8x128xf32>
      %cst_62 = arith.constant -1.000000e+30 : f32
      %249 = vector.broadcast %cst_62 : f32 to vector<8x128xf32>
      %250 = arith.select %127, %246, %249 : vector<8x128xi1>, vector<8x128xf32>
      %251 = arith.addf %arg8, %216 : vector<8x1xf32>
      %252 = vector.broadcast %arg5 : i32 to vector<8x1xi32>
      %253 = arith.cmpi slt, %252, %122 : vector<8x1xi32>
      %254 = vector.shape_cast %253 : vector<8x1xi1> to vector<8x1xi1>
      %255 = vector.broadcast %254 : vector<8x1xi1> to vector<8x128xi1>
      %256 = arith.select %255, %250, %arg6 : vector<8x128xi1>, vector<8x128xf32>
      %257 = vector.shape_cast %253 : vector<8x1xi1> to vector<8x1xi1>
      %258 = vector.broadcast %257 : vector<8x1xi1> to vector<8x128xi1>
      %259 = arith.select %258, %248, %arg7 : vector<8x128xi1>, vector<8x128xf32>
      %260 = arith.select %253, %251, %arg8 : vector<8x1xi1>, vector<8x1xf32>
      scf.yield %256, %259, %260 : vector<8x128xf32>, vector<8x128xf32>, vector<8x1xf32>
    }
    %c1_i32_39 = arith.constant 1 : i32
    %160 = vector.broadcast %c1_i32_39 : i32 to vector<8x1xi32>
    %161 = arith.subi %118, %160 : vector<8x1xi32>
    %162 = vector.broadcast %161 : vector<8x1xi32> to vector<8x128xi32>
    %163 = arith.cmpi eq, %125, %162 : vector<8x128xi32>
    %cst_40 = arith.constant -1.000000e+30 : f32
    %164 = vector.broadcast %cst_40 : f32 to vector<8x128xf32>
    %165 = arith.select %163, %159#0, %164 : vector<8x128xi1>, vector<8x128xf32>
    %cst_41 = arith.constant dense<0xFF800000> : vector<8xf32>
    %166 = vector.multi_reduction <maximumf>, %165, %cst_41 [1] : vector<8x128xf32> to vector<8xf32>
    %167 = vector.shape_cast %166 : vector<8xf32> to vector<8x1xf32>
    %cst_42 = arith.constant -1.000000e+30 : f32
    %168 = vector.broadcast %cst_42 : f32 to vector<8x128xf32>
    %169 = arith.select %163, %159#1, %168 : vector<8x128xi1>, vector<8x128xf32>
    %cst_43 = arith.constant dense<0xFF800000> : vector<8xf32>
    %170 = vector.multi_reduction <maximumf>, %169, %cst_43 [1] : vector<8x128xf32> to vector<8xf32>
    %171 = vector.shape_cast %170 : vector<8xf32> to vector<8x1xf32>
    %172 = arith.maximumf %167, %171 : vector<8x1xf32>
    %173 = arith.subf %167, %172 : vector<8x1xf32>
    %174 = math.exp %173 : vector<8x1xf32>
    %175 = arith.subf %171, %172 : vector<8x1xf32>
    %176 = math.exp %175 : vector<8x1xf32>
    %177 = arith.addf %174, %176 : vector<8x1xf32>
    %178 = math.log %177 : vector<8x1xf32>
    %179 = arith.addf %172, %178 : vector<8x1xf32>
    %cst_44 = arith.constant 0.000000e+00 : f32
    %180 = vector.broadcast %cst_44 : f32 to vector<8x1xf32>
    %181 = arith.subf %180, %179 : vector<8x1xf32>
    %182 = arith.cmpi sge, %122, %118 : vector<8x1xi32>
    %c1_i32_45 = arith.constant 1 : i32
    %183 = vector.broadcast %c1_i32_45 : i32 to vector<8x1xi32>
    %184 = arith.cmpi sge, %118, %183 : vector<8x1xi32>
    %185 = arith.andi %182, %184 : vector<8x1xi1>
    %186 = arith.sitofp %118 : vector<8x1xi32> to vector<8x1xf32>
    %cst_46 = arith.constant 1.000000e+00 : f32
    %187 = vector.broadcast %cst_46 : f32 to vector<8x1xf32>
    %188 = arith.maximumf %186, %187 : vector<8x1xf32>
    %189 = arith.divf %181, %188 : vector<8x1xf32>
    %cst_47 = arith.constant 0.000000e+00 : f32
    %190 = vector.broadcast %cst_47 : f32 to vector<8x1xf32>
    %191 = arith.select %185, %189, %190 : vector<8x1xi1>, vector<8x1xf32>
    %c0_48 = arith.constant 0 : index
    %c0_49 = arith.constant 0 : index
    %192 = vector.load %arg4[%c0_48, %c0_49] : memref<8x1xf32, #tpu.memory_space<vmem>>, vector<8x1xf32>
    tpu.vector_store %arg4[%c0_48, %c0_49], %191 {strides = array<i32>} : memref<8x1xf32, #tpu.memory_space<vmem>>, vector<8x1xf32>,
    return
  }
  func.func @transform_0(%arg0: i32, %arg1: memref<16xi32, #tpu.memory_space<smem>>, %arg2: memref<16xi32, #tpu.memory_space<smem>>) -> (i32, i32, i32) {
    %c0_i32 = arith.constant 0 : i32
    %c0_i32_0 = arith.constant 0 : i32
    %c0_i32_1 = arith.constant 0 : i32
    return %c0_i32, %arg0, %c0_i32_0 : i32, i32, i32
  }
  func.func @transform_1(%arg0: i32, %arg1: memref<16xi32, #tpu.memory_space<smem>>, %arg2: memref<16xi32, #tpu.memory_space<smem>>) -> (i32, i32) {
    %c0_i32 = arith.constant 0 : i32
    %c0_i32_0 = arith.constant 0 : i32
    return %arg0, %c0_i32 : i32, i32
  }
}

</mosaic_0001>

<bundles_post_ra>
// kernel: tpu_custom_call.1
= control target key start
LH: loop header
LB: loop body
LE: loop exit
PB: predicated region body
PF: predicated region fallthrough
CT: control target
= control target key end

     0   :  { %s1059_s0 = inlined_call_operand.hbm [shape: s32[16], index: 0, kind: input, shape index: {}]   ;;  %s1060_s2 = inlined_call_operand.hbm [shape: f32[160,16,128], index: 2, kind: input, shape index: {}]   ;;  %s1061_s3 = inlined_call_operand.vmem [shape: f32[16,1], index: 3, kind: output, shape index: {}]   ;;  %s1062_s1 = inlined_call_operand.hbm [shape: s32[16], index: 1, kind: input, shape index: {}]  }
   0x1   :  { %s581_s14 = scalar_lea.hbm %s1059_s0, 16 }
   0x2   :  { %p582_p0 = scmp.ne.s32.totalorder %s1059_s0, %s581_s14  ;;  %p585_p1 = scmp.lt.u32.totalorder %s581_s14, %s1059_s0 }
   0x4   :  { %p587_p2 = pnand %p585_p1, %p582_p0 }
   0x6   :  { %590 = shalt.err (!%p587_p2)  }
   0x7   :  { %s717_s19 = smov [#allocation3]   ;;  %s591_s24 = scalar_lea.hbm %s1062_s1, 16 }
   0x8   :  { %9 = dma.hbm_to_smem %s1059_s0, 16, %s717_s19, [#allocation2] }
   0x9   :  { %p592_p3 = scmp.ne.s32.totalorder %s1062_s1, %s591_s24  ;;  %p595_p4 = scmp.lt.u32.totalorder %s591_s24, %s1062_s1 }
   0xb   :  { %p597_p5 = pnand %p595_p4, %p592_p3 }
   0xd   :  { %600 = shalt.err (!%p597_p5)  }
   0xe   :  { %s718_s29 = smov [#allocation4]  }
   0xf   :  { %11 = dma.hbm_to_smem %s1062_s1, 16, %s718_s29, [#allocation2] }
  0x10   :  { %671 = dma.done.wait [#allocation2], 32 }
  0x11   :  { %672 = vsyncadd [#allocation2], 4294967264 }
  0x12   :  { %13 = sfence }
  0x13   :  { %14 = vsyncpa [#allocation6], 0 }
  0x14   :  { %16 = vsyncpa [#allocation6 + $0x1], 0  ;;  %s768_s0 = smov 0   ;;  %s770_s5 = smov 0  }
  0x15   :  { %s772_s6 = smov 0   ;;  %s774_s7 = smov 0  }
  0x16 LB: > { %s787_s1 = sadd.s32 4294967295, %s691_s7   ;;  %s790_s8 = sadd.s32 1, %s691_s7   ;;  %s691_s7 = sphi %s774_s7, %s1076_s7   ;;  %s687_s6 = sphi %s772_s6, %s1075_s6   ;;  %s683_s5 = sphi %s770_s5, %s1074_s5   ;;  %s679_s0 = sphi %s768_s0, %s1073_s0  }
  0x17   : > { %s26_s9 = ssub.s32 %s691_s7, %s790_s8  ;;  %s29_s10 = sadd.s32 1, %s687_s6 }
  0x18   : > { %p27_p6 = scmp.eq.s32.totalorder %s26_s9, 0  ;;  %p36_p7 = scmp.ne.s32.totalorder %s687_s6, %s683_s5 }
  0x19   : > { %p37_p8 = scmp.eq.s32.totalorder %s691_s7, 0  ;;  %p42_p9 = scmp.ne.s32.totalorder %s683_s5, %s679_s0 }
  0x1a   : > { %s800_s11 = scalar_select %p27_p6, %s687_s6, %s29_s10  }
  0x1b   : > { %p38_p10 = por %p37_p8, %p36_p7  ;;  %p43_p11 = scmp.eq.s32.totalorder %s787_s1, 0 }
  0x1c   : > { %p460_p12 = scmp.lt.s32.totalorder %s691_s7, 2  ;;  %s92_s13 = sand.u32 1, %s687_s6  }
  0x1d   : > { %p804_p13 = por %p43_p11, %p42_p9  ;;  %s452_s14 = smul.u32 1280, %s92_s13 }
  0x1e   : > { %s440_s15 = sshll.u32 %s691_s7, 7  ;;  %p810_p0 = pnand %p460_p12, %p38_p10 }
  0x1f   : > { %s817_s19 = scalar_lea.hbm %s1060_s2, %s440_s15  ;;  %s96_s20 = scalar_lea.vmem [#allocation5], %s452_s14 }
  0x20   : > { %s102_s21 = sshll.u32 %s96_s20, 4  ;;  %s821_s22 = scalar_lea.sflag [#allocation6], %s92_s13  ;;  %s819_s21 = int_to_ptr.vmem [resolvable:$true] %s102_s21 }
  0x21   : > { %s601_s23 = scalar_lea.hbm %s817_s19, 20480  ;;  %p603_p2 = pneg %p810_p0 }
  0x22   : > { %p602_p1 = scmp.ne.s32.totalorder %s817_s19, %s601_s23  ;;  %s606_s26 = scalar_lea.hbm %s1060_s2, 40960 }
  0x23   : > { %p607_p5 = scmp.lt.u32.totalorder %s817_s19, %s1060_s2  ;;  %p608_p6 = scmp.lt.u32.totalorder %s606_s26, %s601_s23 }
  0x24   : > { %p604_p3 = pnand %p603_p2, %p602_p1  ;;  %p610_p8 = scmp.lt.u32.totalorder %s601_s23, %s817_s19 }
  0x25   : > { %p609_p7 = por %p608_p6, %p607_p5 }
  0x26   : > { %p605_p4 = pneg %p604_p3 }
  0x27   : > { %p611_p9 = por %p610_p8, %p609_p7 }
  0x29   : > { %p612_p10 = pnand %p611_p9, %p605_p4 }
  0x2b   : > { %615 = shalt.err (!%p612_p10)
}
  0x2c   : > { %s616_s29 = scalar_lea.vmem %s819_s21, 20480  ;;  %s719_s30 = smov [#allocation5]  }
  0x2d   : > { %p617_p11 = scmp.ne.s32.totalorder %s819_s21, %s616_s29  ;;  %s621_s4 = sshll.u32 %s719_s30, 4  ;;  %s622_s4 = int_to_ptr.vmem [resolvable:$false] %s621_s4 }
  0x2e   : > { %s623_s0 = scalar_lea.vmem %s622_s4, 40960  ;;  %p624_p3 = scmp.lt.s32.totalorder %s819_s21, %s622_s4 }
  0x2f   : > { %p619_p12 = pnand %p617_p11, %p603_p2  ;;  %p625_p5 = scmp.lt.s32.totalorder %s623_s0, %s616_s29 }
  0x31   : > { %p620_p1 = pneg %p619_p12  ;;  %p626_p6 = por %p625_p5, %p624_p3 }
  0x33   : > { %p627_p7 = pnand %p626_p6, %p620_p1 }
  0x35   : > { %630 = shalt.err (!%p627_p7)
}
  0x36   : > { %s720_s9 = smov 256   ;;  %s721_s10 = smov 128  }
  0x37   : > { %s722_s13 = smov 8   ;;  %p441_p2 = scmp.ge.s32.totalorder %s691_s7, 1 }
  0x38   : > { %459 = dma.hbm_to_vmem [thread:$0]  (!%p810_p0), %s817_s19, 20480, %s819_s21, %s821_s22, %s720_s9, %s721_s10, %s722_s13  }
  0x39   : > { %p110_p4 = scmp.lt.s32.totalorder %s691_s7, 3 }
  0x3b   : > { %p111_p8 = pnand %p441_p2, %p110_p4 }
  0x3c   : > { %s116_s14 = sand.u32 (!%p111_p8), 1, %s683_s5  }
  0x3d   : > { %114 = sbr.rel (%p111_p8) target bundleno = 936 (0x3a8), region = 24  ;;  %s117_s17 = scalar_lea.sflag (!%p111_p8), [#allocation6], %s116_s14 }
  0x3e   : > { %s852_s15 = smul.u32 (!%p111_p8), 1280, %s116_s14 }
  0x40   : > { %s120_s18 = scalar_lea.vmem (!%p111_p8), [#allocation5], %s852_s15 }
  0x44   : > { %674 = dma.done.wait (%p804_p13), %s117_s17, 20480  }
  0x45   : > { %676 = vsyncadd (%p804_p13), %s117_s17, 4294946816  ;;  %s860_s16 = sshll.u32 %s787_s1, 3  ;;  %v143_v0 = vlaneseq  ;;  %v230_v32 = vld [vmem:[%s120_s18] sm:$0xff]  ;;  %p138_p6 = scmp.lt.s32.totalorder %s787_s1, 1  ;;  %v968_v56 = vmov -1e+30  }
  0x46   : > { %s145_s7 = sld [smem:[#allocation3 + %s860_s16]]  ;;  %s154_s20 = sadd.s32 1, %s860_s16 }
  0x47   : > { %s146_s19 = sld [smem:[#allocation4 + %s860_s16]]  ;;  %v865_v1 = vshrl.u32 %v143_v0, 7  ;;  %s164_s21 = sadd.s32 2, %s860_s16  ;;  %v915_v30 = vand.u32 127, %v143_v0 }
  0x48   : > { %s155_s22 = sld [smem:[#allocation3 + %s154_s20]]  ;;  %s174_s25 = sadd.s32 3, %s860_s16 }
  0x49   : > { %s869_s12 = sld [smem:[#allocation4 + %s154_s20]]  ;;  %vm147_vm0 = vcmp.eq.s32.totalorder %v865_v1, 0  ;;  %s184_s26 = sadd.s32 4, %s860_s16  ;;  %vm157_vm1 = vcmp.eq.s32.totalorder %v865_v1, 1  ;;  %vm167_vm2 = vcmp.eq.s32.totalorder %v865_v1, 2  ;;  %vm177_vm3 = vcmp.eq.s32.totalorder %v865_v1, 3 }
  0x4a   : > { %s165_s23 = sld [smem:[#allocation3 + %s164_s21]]  ;;  %s194_s4 = sadd.s32 5, %s860_s16  ;;  %vm187_vm4 = vcmp.eq.s32.totalorder %v865_v1, 4  ;;  %vm197_vm5 = vcmp.eq.s32.totalorder %v865_v1, 5  ;;  %vm207_vm6 = vcmp.eq.s32.totalorder %v865_v1, 6  ;;  %vm217_vm7 = vcmp.eq.s32.totalorder %v865_v1, 7 }
  0x4b   : > { %s871_s24 = sld [smem:[#allocation4 + %s164_s21]]  ;;  %s204_s10 = sadd.s32 6, %s860_s16  ;;  %vm229_vm8 = vcmp.eq.s32.totalorder %v915_v30, 0 }
  0x4c   : > { %s876_s27 = sld [smem:[#allocation3 + %s174_s25]]  ;;  %v148_v2 = vstv %s145_s7  ;;  %s214_s17 = sadd.s32 7, %s860_s16 }
  0x4d   : > { %s878_s28 = sld [smem:[#allocation4 + %s174_s25]]  ;;  %v150_v3 = vstv %s146_s19  ;;  %p152_p13 = scmp.gt.s32.totalorder %s146_s19, 0  ;;  %v149_v4 = vsel %vm147_vm0, %v148_v2, 0 }
  0x4e   : > { %s185_s29 = sld [smem:[#allocation3 + %s184_s26]]  ;;  %v151_v5 = vsel %vm147_vm0, %v150_v3, 0  ;;  %v158_v6 = vstv %s155_s22  ;;  %s1094_s1 = smov (!%p138_p6, %s787_s1), 1 }
  0x4f   : > { %s882_s30 = sld [smem:[#allocation4 + %s184_s26]]  ;;  %s1078_s19 = smov (!%p152_p13, %s146_s19), 0  ;;  %v160_v7 = vstv %s869_s12  ;;  %v159_v8 = vsel %vm157_vm1, %v158_v6, %v149_v4 }
  0x50   : > { %v161_v9 = vsel %vm157_vm1, %v160_v7, %v151_v5  ;;  %v168_v10 = vstv %s165_s23  ;;  %s195_s0 = sld [smem:[#allocation3 + %s194_s4]]  ;;  %p162_p0 = scmp.gt.s32.totalorder %s1078_s19, %s869_s12 }
  0x51   : > { %v170_v11 = vstv %s871_s24  ;;  %s888_s9 = sld [smem:[#allocation4 + %s194_s4]]  ;;  %v169_v12 = vsel %vm167_vm2, %v168_v10, %v159_v8  ;;  %s442_s21 = sshll.u32 %s1094_s1, 3 }
  0x52   : > { %v171_v13 = vsel %vm167_vm2, %v170_v11, %v161_v9  ;;  %v178_v14 = vstv %s876_s27  ;;  %s205_s13 = sld [smem:[#allocation3 + %s204_s10]]  ;;  %s1080_s19 = smov (!%p162_p0, %s1078_s19), %s869_s12 }
  0x53   : > { %v180_v15 = vstv %s878_s28  ;;  %s895_s14 = sld [smem:[#allocation4 + %s204_s10]]  ;;  %v179_v16 = vsel %vm177_vm3, %v178_v14, %v169_v12  ;;  %p172_p9 = scmp.gt.s32.totalorder %s1080_s19, %s871_s24 }
  0x54   : > { %v181_v17 = vsel %vm177_vm3, %v180_v15, %v171_v13  ;;  %v188_v18 = vstv %s185_s29  ;;  %s215_s7 = sld [smem:[#allocation3 + %s214_s17]]  ;;  %s961_s23 = scalar_lea.vmem %s1061_s3, %s442_s21 }
  0x55   : > { %v189_v19 = vsel %vm187_vm4, %v188_v18, %v179_v16  ;;  %v190_v20 = vstv %s882_s30  ;;  %s908_s20 = sld [smem:[#allocation4 + %s214_s17]]  ;;  %s1082_s19 = smov (!%p172_p9, %s1080_s19), %s871_s24 }
  0x56   : > { %v191_v21 = vsel %vm187_vm4, %v190_v20, %v181_v17  ;;  %v198_v22 = vstv %s195_s0  ;;  %p182_p10 = scmp.gt.s32.totalorder %s1082_s19, %s878_s28 }
  0x57   : > { %v200_v23 = vstv %s888_s9  ;;  %v199_v24 = vsel %vm197_vm5, %v198_v22, %v189_v19 }
  0x58   : > { %v201_v25 = vsel %vm197_vm5, %v200_v23, %v191_v21  ;;  %v208_v26 = vstv %s205_s13  ;;  %s1084_s19 = smov (!%p182_p10, %s1082_s19), %s878_s28 }
  0x59   : > { %v210_v27 = vstv %s895_s14  ;;  %v209_v28 = vsel %vm207_vm6, %v208_v26, %v199_v24  ;;  %p192_p11 = scmp.gt.s32.totalorder %s1084_s19, %s882_s30 }
  0x5a   : > { %v211_v29 = vsel %vm207_vm6, %v210_v27, %v201_v25  ;;  %v218_v31 = vstv %s215_s7 }
  0x5b   : > { %v921_v33 = vsel %vm217_vm7, %v218_v31, %v209_v28  ;;  %v220_v34 = vstv %s908_s20  ;;  %s1086_s19 = smov (!%p192_p11, %s1084_s19), %s882_s30 }
  0x5c   : > { %v925_v35 = vsel %vm217_vm7, %v220_v34, %v211_v29  ;;  %vm929_vm9 = vcmp.lt.s32.totalorder %v915_v30, %v921_v33  ;;  %p202_p12 = scmp.gt.s32.totalorder %s1086_s19, %s888_s9 }
  0x5d   : > { %v231_v37 = vsel %vm929_vm9, %v230_v32, -1e+30  ;;  %vm939_vm10 = vmand %vm229_vm8, %vm929_vm9 }
  0x5e   : > { %232 = vmax.xlane.f32.xlu0 %v231_v37  ;;  %s1088_s19 = smov (!%p202_p12, %s1086_s19), %s888_s9 }
  0x5f   : > { %p212_p1 = scmp.gt.s32.totalorder %s1088_s19, %s895_s14 }
  0x61   : > { %s1090_s19 = smov (!%p212_p1, %s1088_s19), %s895_s14 }
  0x62   : > { %p222_p3 = scmp.gt.s32.totalorder %s1090_s19, %s908_s20 }
  0x64   : > { %s1092_s19 = smov (!%p222_p3, %s1090_s19), %s908_s20 }
  0x65   : > { %p224_p5 = scmp.lt.s32.totalorder %s1092_s19, 160  ;;  %p449_p7 = scmp.le.s32.totalorder %s1092_s19, 1 }
  0x66   : > { %v974_v57 = vmov (!%p449_p7), -1e+30   ;;  %s976_s1 = smov (!%p449_p7), 1  }
  0x67   : > { %s954_s16 = scalar_select %p224_p5, %s1092_s19, 160 }
  0xeb   : > { %v233_v39 = vpop.xlane.xlu0 %232 }
  0xec   : > { %v234_v40 = vmax.f32 %v233_v39, -1.0 }
  0xee   : > { %v235_v41 = vsub.f32 %v231_v37, %v234_v40  ;;  %v240_v44 = vsub.f32 -1.0, %v234_v40 }
  0xf0   : > { %v236_v42 = vmul.f32 1.442695, %v235_v41  ;;  %v241_v45 = vmul.f32 1.442695, %v240_v44 }
  0xf2   : > { %547 = vpow2.f32 %v236_v42 }
  0xf3   : > { %549 = vpow2.f32 %v241_v45 }
  0xfc   : > { %v548_v43 = vpop.eup %547 }
  0xfd   : > { %238 = vadd.xlane.f32.xlu0 %v548_v43  ;;  %v550_v46 = vpop.eup %549 }
 0x18a   : > { %v239_v47 = vpop.xlane.xlu0 %238 }
 0x18b   : > { %v243_v48 = vadd.f32 %v550_v46, %v239_v47 }
 0x18d   : > { %551 = vlog2.f32 %v243_v48 }
 0x197   : > { %v552_v49 = vpop.eup %551 }
 0x198   : > { %v245_v50 = vmul.f32 0.6931472, %v552_v49 }
 0x199   : > { %404 = sbr.rel (%p449_p7) target bundleno = 745 (0x2e9), region = 66 }
 0x19a   : > { %v246_v51 = vadd.f32 %v245_v50, %v234_v40 }
 0x19c   : > { %v247_v52 = vsub.f32 %v231_v37, %v246_v51  ;;  %v248_v53 = vsub.f32 -1.0, %v246_v51  }
 0x19e   : > { %v250_v54 = vsel %vm939_vm10, %v247_v52, -1e+30  }
 0x19f   : > { %v1069_v55 = vmov %v250_v54 }
 0x1a0 LB: >> { %s445_s19 = sshll.u32 %s707_s1, 3  ;;  %s723_s24 = smov 1   ;;  %v304_v7 = vmax.f32 %v703_v57, %v699_v54  ;;  %v319_v41 = vstv %s707_s1  ;;  %s707_s1 = sphi %s976_s1, %s254_s1   ;;  %v703_v57 = vphi %v974_v57, %v1071_v57   ;;  %v699_v54 = vphi %v250_v54, %v1070_v54   ;;  %v695_v53 = vphi %v248_v53, %v325_v53  }
 0x1a1   : >> { %284 = vrot.lane.b32.xlu1 %v699_v54, %s723_s24  ;;  %s261_s25 = scalar_lea.vmem %s120_s18, %s445_s19 [#allocation5]  ;;  %vm320_vm11 = vcmp.lt.s32.totalorder %v319_v41, %v925_v35  ;;  %s254_s1 = sadd.s32 1, %s707_s1  }
 0x1a2   : >> { %v262_v58 = vld [vmem:[%s261_s25] sm:$0xff]  ;;  %v305_v10 = vsub.f32 %v703_v57, %v304_v7  ;;  %v308_v11 = vsub.f32 %v699_v54, %v304_v7  ;;  %p253_p2 = scmp.ge.s32.totalorder %s254_s1, %s954_s16 }
 0x1a3   : >> { %v996_v59 = vsel %vm929_vm9, %v262_v58, -1e+30 }
 0x1a4   : >> { %264 = vmax.xlane.f32.xlu0 %v996_v59  ;;  %v306_v15 = vmul.f32 1.442695, %v305_v10  ;;  %v309_v16 = vmul.f32 1.442695, %v308_v11 }
 0x1ba   : >> { %281 = vrot.lane.b32.xlu0 %v703_v57, %s723_s24 }
 0x213   : >> { %v285_v3 = vpop.permute.xlu1 %284 }
 0x214   : >> { %v286_v5 = vsel %vm229_vm8, -1e+30, %v285_v3 }
 0x231   : >> { %v265_v60 = vpop.xlane.xlu0 %264 }
 0x232   : >> { %v266_v61 = vmax.f32 %v265_v60, -1.0 }
 0x234   : >> { %v267_v62 = vsub.f32 %v996_v59, %v266_v61  ;;  %v272_v18 = vsub.f32 -1.0, %v266_v61 }
 0x235   : >> { %v282_v1 = vpop.permute.xlu0 %281 }
 0x236   : >> { %v268_v63 = vmul.f32 1.442695, %v267_v62  ;;  %v283_v2 = vsel %vm229_vm8, %v695_v53, %v282_v1  ;;  %v273_v19 = vmul.f32 1.442695, %v272_v18 }
 0x237   : >> { %v287_v4 = vmax.f32 %v699_v54, %v283_v2 }
 0x238   : >> { %553 = vpow2.f32 %v268_v63 }
 0x239   : >> { %v288_v6 = vmax.f32 %v287_v4, %v286_v5 }
 0x23b   : >> { %v289_v8 = vsub.f32 %v699_v54, %v288_v6  ;;  %v292_v9 = vsub.f32 %v283_v2, %v288_v6  ;;  %v296_v14 = vsub.f32 %v286_v5, %v288_v6 }
 0x23d   : >> { %v290_v12 = vmul.f32 1.442695, %v289_v8  ;;  %v293_v13 = vmul.f32 1.442695, %v292_v9  ;;  %v297_v17 = vmul.f32 1.442695, %v296_v14 }
 0x23f   : >> { %555 = vpow2.f32 %v290_v12 }
 0x240   : >> { %557 = vpow2.f32 %v293_v13 }
 0x241   : >> { %559 = vpow2.f32 %v306_v15 }
 0x242   : >> { %v554_v0 = vpop.eup %553  ;;  %561 = vpow2.f32 %v309_v16 }
 0x243   : >> { %270 = vadd.xlane.f32.xlu1 %v554_v0  ;;  %563 = vpow2.f32 %v297_v17 }
 0x244   : >> { %565 = vpow2.f32 %v273_v19 }
 0x249   : >> { %v556_v20 = vpop.eup %555 }
 0x24a   : >> { %v558_v21 = vpop.eup %557 }
 0x24b   : >> { %v560_v22 = vpop.eup %559  ;;  %v295_v24 = vadd.f32 %v558_v21, %v556_v20 }
 0x24c   : >> { %v562_v23 = vpop.eup %561 }
 0x24d   : >> { %v564_v25 = vpop.eup %563  ;;  %v311_v26 = vadd.f32 %v562_v23, %v560_v22 }
 0x24e   : >> { %v299_v27 = vadd.f32 %v564_v25, %v295_v24  ;;  %v566_v28 = vpop.eup %565 }
 0x24f   : >> { %567 = vlog2.f32 %v311_v26 }
 0x250   : >> { %569 = vlog2.f32 %v299_v27 }
 0x259   : >> { %v568_v32 = vpop.eup %567 }
 0x25a   : >> { %v570_v34 = vpop.eup %569  ;;  %v313_v37 = vmul.f32 0.6931472, %v568_v32 }
 0x25b   : >> { %v301_v39 = vmul.f32 0.6931472, %v570_v34 }
 0x25c   : >> { %v314_v43 = vadd.f32 %v313_v37, %v304_v7 }
 0x25d   : >> { %v302_v44 = vadd.f32 %v301_v39, %v288_v6 }
 0x2d0   : >> { %v271_v29 = vpop.xlane.xlu1 %270 }
 0x2d1   : >> { %v275_v31 = vadd.f32 %v566_v28, %v271_v29 }
 0x2d3   : >> { %571 = vlog2.f32 %v275_v31 }
 0x2dd   : >> { %v572_v38 = vpop.eup %571 }
 0x2de   : >> { %v277_v40 = vmul.f32 0.6931472, %v572_v38 }
 0x2e0   : >> { %v278_v42 = vadd.f32 %v277_v40, %v266_v61 }
 0x2e2   : >> { %v279_v45 = vsub.f32 %v996_v59, %v278_v42  ;;  %v280_v46 = vsub.f32 -1.0, %v278_v42  ;;  %256 = sbr.rel (!%p253_p2) target bundleno = 416 (0x1a0), region = 72 }
 0x2e4   : >> { %v303_v47 = vadd.f32 %v302_v44, %v279_v45  ;;  %v315_v48 = vadd.f32 %v314_v43, %v280_v46  ;;  %v318_v49 = vadd.f32 %v695_v53, %v280_v46 }
 0x2e6   : >> { %v316_v50 = vsel %vm929_vm9, %v303_v47, -1e+30  ;;  %v317_v51 = vsel %vm929_vm9, %v315_v48, -1e+30  ;;  %v325_v53 = vsel %vm320_vm11, %v318_v49, %v695_v53  }
 0x2e7   : >> { %v323_v52 = vsel %vm320_vm11, %v317_v51, %v703_v57   ;;  %v324_v55 = vsel %vm320_vm11, %v316_v50, %v699_v54  }
 0x2e8   : >> { %v1070_v54 = vmov %v324_v55  ;;  %v1071_v57 = vmov %v323_v52  ;;  %v1072_v56 = vmov (%p253_p2), %v323_v52 }
 0x2e9 PF: > { %v446_v57 = vadd.s32 4294967295, %v921_v33  ;;  %v349_v1 = vcvt.s32.f32 %v921_v33  ;;  %vm346_vm13 = vcmp.ge.s32.totalorder %v925_v35, %v921_v33  ;;  %vm347_vm14 = vcmp.ge.s32.totalorder %v921_v33, 1  ;;  %v715_v56 = vphi %v968_v56, %v1072_v56   ;;  %v711_v55 = vphi %v1069_v55, %v324_v55  }
 0x2ea   : > { %vm348_vm15 = vmand %vm346_vm13, %vm347_vm14  ;;  %vm354_vm0 = vcmask 7168  }
 0x2eb   : > { %vm327_vm12 = vcmp.eq.s32.totalorder %v915_v30, %v446_v57  ;;  %v350_v30 = vmax.f32 %v349_v1, 1.0 }
 0x2ec   : > { %v328_v58 = vsel %vm327_vm12, %v715_v56, -1e+30  ;;  %v331_v59 = vsel %vm327_vm12, %v711_v55, -1e+30 }
 0x2ed   : > { %329 = vmax.xlane.f32.xlu0 %v328_v58 }
 0x2f1   : > { %332 = vmax.xlane.f32.xlu0 %v331_v59 }
 0x37a   : > { %v330_v60 = vpop.xlane.xlu0 %329 }
 0x37e   : > { %v333_v61 = vpop.xlane.xlu0 %332 }
 0x37f   : > { %v334_v36 = vmax.f32 %v330_v60, %v333_v61 }
 0x381   : > { %v335_v53 = vsub.f32 %v330_v60, %v334_v36  ;;  %v338_v54 = vsub.f32 %v333_v61, %v334_v36 }
 0x383   : > { %v336_v62 = vmul.f32 1.442695, %v335_v53  ;;  %v339_v63 = vmul.f32 1.442695, %v338_v54 }
 0x385   : > { %573 = vpow2.f32 %v336_v62 }
 0x386   : > { %575 = vpow2.f32 %v339_v63 }
 0x38f   : > { %v574_v0 = vpop.eup %573 }
 0x390   : > { %v576_v2 = vpop.eup %575 }
 0x391   : > { %v341_v3 = vadd.f32 %v576_v2, %v574_v0 }
 0x393   : > { %577 = vlog2.f32 %v341_v3 }
 0x394   : > { %579 = vrcp.f32 %v350_v30 }
 0x39d   : > { %v578_v56 = vpop.eup %577 }
 0x39e   : > { %v343_v4 = vmul.f32 0.6931472, %v578_v56  ;;  %v580_v6 = vpop.eup %579 }
 0x3a0   : > { %v344_v5 = vadd.f32 %v343_v4, %v334_v36 }
 0x3a2   : > { %v345_v7 = vsub.f32 0.0, %v344_v5 }
 0x3a4   : > { %v352_v8 = vmul.f32 %v580_v6, %v345_v7 }
 0x3a6   : > { %v353_v9 = vsel %vm348_vm15, %v352_v8, 0.0 }
 0x3a7   : > { %355 = vst.msk [vmem:[%s961_s23] sm:$0xff] %vm354_vm0, %v353_v9 }
 0x3a8 PF: > { %p19_p4 = scmp.ge.s32.totalorder %s790_s8, 4   ;;  %s1073_s0 = smov %s683_s5 }
 0x3a9   : > { %s1074_s5 = smov %s687_s6  ;;  %s1075_s6 = smov %s800_s11 }
 0x3aa   : > { %s1076_s7 = smov %s790_s8  ;;  %21 = sbr.rel (!%p19_p4) target bundleno = 22 (0x16), region = 83 }
 0x3b1   :  { %375 = vsyncpa [#allocation6], 1 }
 0x3b2   :  { %377 = vsyncpa [#allocation6 + $0x1], 1 }

</bundles_post_ra>
